<compile_context>
chip_gen: v6e
topology: v6e:2x2x1
jax: 0.10.0
libtpu: 0.0.40
codegen_flags: <defaults>
</compile_context>

<pallas_src>
import functools

import numpy as np

import jax
import jax.numpy as jnp
from jax.experimental import pallas as pl
from jax.experimental.pallas import tpu as pltpu


def _scale_spatial_attention_kernel(w3_ref, w1_ref, wA_ref, m_ref, x_ref,
                                    o_ref, *, W, Nb):
    x = x_ref[...].astype(jnp.float32)            # (Nb, C, HW)
    wA = wA_ref[...].astype(jnp.float32)          # (F, C)
    masks = m_ref[...]                            # (8, HW) 0/1 f32 edge masks

    # ---- torch.mean(x, dim=1, keepdim=True): channel mean ------------------
    g = jnp.mean(x, axis=1)                       # (Nb, HW)

    # ---- spatial_wise[0]: Conv2d(1,1,k=3,pad=1,bias=False) -----------------
    # Zero-padded 'SAME' cross-correlation on the flattened HW axis:
    # one lane roll per tap; boundary masks hoisted to the host; the center
    # tap needs no mask.
    acc = w3_ref[4] * g                           # center tap (scalar from SMEM)
    t = 0
    for dy in (-1, 0, 1):
        for dx in (-1, 0, 1):
            if dy == 0 and dx == 0:
                continue
            w = w3_ref[(dy + 1) * 3 + (dx + 1)]               # scalar tap
            shifted = jnp.roll(g, -(dy * W + dx), axis=1)     # single lane roll
            acc = acc + (w * masks[t])[None, :] * shifted
            t += 1

    # ---- ReLU -> Conv2d(1,1,k=1,bias=False) -> Sigmoid ---------------------
    s = jax.nn.sigmoid(w1_ref[0] * jnp.maximum(acc, 0.0))     # (Nb, HW)

    # ---- (spatial_atten + x) -> attention_wise (1x1 conv == channel matmul)
    y = x + s[:, None, :]                                     # (Nb, C, HW)
    F_, C_ = wA.shape
    wA_b = jnp.broadcast_to(wA[None], (Nb, F_, C_))           # tiny broadcast
    o = jnp.einsum('nfc,nch->nfh', wA_b, y,
                   preferred_element_type=jnp.float32)        # (Nb, F, HW)
    o_ref[...] = jax.nn.sigmoid(o).astype(o_ref.dtype)        # one full store


def _edge_masks(H, W):
    """0/1 float validity masks for the 8 non-center taps of a zero-padded
    3x3 conv, on the flattened H*W axis (same tap order as the kernel)."""
    pos = np.arange(H * W)
    r, c = pos // W, pos % W
    ones = np.ones(H * W, dtype=bool)
    row_ok = {-1: r >= 1, 0: ones, 1: r <= H - 2}
    col_ok = {-1: c >= 1, 0: ones, 1: c <= W - 2}
    rows = []
    for dy in (-1, 0, 1):
        for dx in (-1, 0, 1):
            if dy == 0 and dx == 0:
                continue
            rows.append((row_ok[dy] & col_ok[dx]).astype(np.float32))
    return jnp.asarray(np.stack(rows, axis=0))    # (8, H*W)


def scale_spatial_attention(x, w3, w1, wA, *, block_n=None):
    """x: (N, C, H, W); w3: (1,1,3,3); w1: (1,1,1,1); wA: (F, C, 1, 1)."""
    N, C, H, W = x.shape
    F = wA.shape[0]
    HW = H * W

    # Images per grid step: aim for a few hundred KiB of input per block to
    # amortize per-step overhead, but keep grid length >= 2 so the batch axis
    # can shard across v7x's two TensorCores (no-op on v5e/v6e).
    if block_n is None:
        per_image_bytes = C * HW * x.dtype.itemsize
        target_nb = max(1, (256 * 1024) // max(per_image_bytes, 1))
        cap = max(1, N // 2) if N >= 2 else 1
        nb = max(1, min(target_nb, cap, N))
        while N % nb:
            nb -= 1
        block_n = nb
    grid_n = N // block_n

    x_flat = x.reshape(N, C, HW)                  # lane-dense trailing axis
    masks = _edge_masks(H, W)

    kernel = functools.partial(_scale_spatial_attention_kernel,
                               W=W, Nb=block_n)
    smem_spec = pl.BlockSpec(memory_space=pltpu.MemorySpace.SMEM)
    out = pl.pallas_call(
        kernel,
        out_shape=jax.ShapeDtypeStruct((N, F, HW), x.dtype),
        grid=(grid_n,),
        in_specs=[smem_spec,                                    # w3 taps (9,)
                  smem_spec,                                    # w1 tap  (1,)
                  pl.BlockSpec((F, C), lambda n: (0, 0)),       # wA (F, C)
                  pl.BlockSpec((8, HW), lambda n: (0, 0)),      # edge masks
                  pl.BlockSpec((block_n, C, HW), lambda n: (n, 0, 0))],
        out_specs=pl.BlockSpec((block_n, F, HW), lambda n: (n, 0, 0)),
        compiler_params=pltpu.CompilerParams(
            dimension_semantics=("parallel",),
            vmem_limit_bytes=32 * 1024 * 1024),
    )(w3.reshape(-1), w1.reshape(-1), wA.reshape(F, C), masks, x_flat)
    return out.reshape(N, F, H, W)


def reference(x, w3, w1, wA):
    dn = ('NCHW', 'OIHW', 'NCHW')
    g = jnp.mean(x, axis=1, keepdims=True)
    c3 = jax.lax.conv_general_dilated(g, w3, (1, 1), 'SAME',
                                      dimension_numbers=dn)
    h = jax.nn.relu(c3)
    c1 = jax.lax.conv_general_dilated(h, w1, (1, 1), 'SAME',
                                      dimension_numbers=dn)
    s = jax.nn.sigmoid(c1)
    y = s + x
    c2 = jax.lax.conv_general_dilated(y, wA, (1, 1), 'SAME',
                                      dimension_numbers=dn)
    return jax.nn.sigmoid(c2)


if __name__ == "__main__":
    N, C, F, H, W = 2, 4, 4, 16, 16   # batch, in_channels, num_features, H, W

    key = jax.random.PRNGKey(0)
    kx, k3, k1, kA = jax.random.split(key, 4)

    x = jax.random.normal(kx, (N, C, H, W), dtype=jnp.float32)
    # Deterministic synthetic weights matching the nn.Module parameter shapes:
    w3 = 0.3 * jax.random.normal(k3, (1, 1, 3, 3), dtype=jnp.float32)  # spatial_wise[0]
    w1 = 0.5 * jax.random.normal(k1, (1, 1, 1, 1), dtype=jnp.float32)  # spatial_wise[2]
    wA = 0.3 * jax.random.normal(kA, (F, C, 1, 1), dtype=jnp.float32)  # attention_wise[0]

    out = scale_spatial_attention(x, w3, w1, wA)
    out = jax.block_until_ready(out)

    ref = jax.block_until_ready(reference(x, w3, w1, wA))
    assert out.shape == (N, F, H, W)
    assert jnp.allclose(out, ref, atol=1e-4, rtol=1e-4), (
        f"max abs err = {jnp.max(jnp.abs(out - ref))}")

    print("KERNEL_OK")
</pallas_src>

<mosaic_0001>
module attributes {stable_mosaic.version = 11 : i64} {
  func.func @_scale_spatial_attention_kernel(%arg0: i32, %arg1: memref<9xf32, #tpu.memory_space<smem>>, %arg2: memref<1xf32, #tpu.memory_space<smem>>, %arg3: memref<4x4xf32, #tpu.memory_space<vmem>>, %arg4: memref<8x256xf32, #tpu.memory_space<vmem>>, %arg5: memref<1x4x256xf32, #tpu.memory_space<vmem>>, %arg6: memref<1x4x256xf32, #tpu.memory_space<vmem>>) attributes {dimension_semantics = [#tpu.dimension_semantics<parallel>], iteration_bounds = array<i64: 2>, scalar_prefetch = 0 : i64, scratch_operands = 0 : i64, tpu.core_type = #tpu.core_type<tc>, window_params = [{transform_indices = @transform_0, window_bounds = array<i64: 9>}, {transform_indices = @transform_1, window_bounds = array<i64: 1>}, {pipeline_mode = #tpu.pipeline_mode<synchronous>, transform_indices = @transform_2, window_bounds = array<i64: 4, 4>}, {pipeline_mode = #tpu.pipeline_mode<synchronous>, transform_indices = @transform_3, window_bounds = array<i64: 8, 256>}, {transform_indices = @transform_4, window_bounds = array<i64: 1, 4, 256>}, {transform_indices = @transform_5, window_bounds = array<i64: 1, 4, 256>}]} {
    %c0 = arith.constant 0 : index
    %c0_0 = arith.constant 0 : index
    %c0_1 = arith.constant 0 : index
    %0 = vector.load %arg5[%c0, %c0_0, %c0_1] : memref<1x4x256xf32, #tpu.memory_space<vmem>>, vector<1x4x256xf32>
    %c0_2 = arith.constant 0 : index
    %c0_3 = arith.constant 0 : index
    %1 = vector.load %arg3[%c0_2, %c0_3] : memref<4x4xf32, #tpu.memory_space<vmem>>, vector<4x4xf32>
    %c0_4 = arith.constant 0 : index
    %c0_5 = arith.constant 0 : index
    %2 = vector.load %arg4[%c0_4, %c0_5] : memref<8x256xf32, #tpu.memory_space<vmem>>, vector<8x256xf32>
    %cst = arith.constant dense<0.000000e+00> : vector<1x256xf32>
    %3 = vector.multi_reduction <add>, %0, %cst [1] : vector<1x4x256xf32> to vector<1x256xf32>
    %cst_6 = arith.constant 4.000000e+00 : f32
    %4 = vector.broadcast %cst_6 : f32 to vector<1x256xf32>
    %5 = arith.divf %3, %4 : vector<1x256xf32>
    %c4 = arith.constant 4 : index
    %6 = memref.load %arg1[%c4] : memref<9xf32, #tpu.memory_space<smem>>
    %7 = vector.broadcast %6 : f32 to vector<1x256xf32>
    %8 = arith.mulf %7, %5 : vector<1x256xf32>
    %c0_7 = arith.constant 0 : index
    %9 = memref.load %arg1[%c0_7] : memref<9xf32, #tpu.memory_space<smem>>
    %10 = vector.extract_strided_slice %5 {offsets = [0, 239], sizes = [1, 17], strides = [1, 1]} : vector<1x256xf32> to vector<1x17xf32>
    %11 = vector.extract_strided_slice %5 {offsets = [0, 0], sizes = [1, 239], strides = [1, 1]} : vector<1x256xf32> to vector<1x239xf32>
    %12 = tpu.concatenate %10, %11 in 1 : vector<1x17xf32>, vector<1x239xf32> -> vector<1x256xf32>
    %13 = vector.extract_strided_slice %2 {offsets = [0, 0], sizes = [1, 256], strides = [1, 1]} : vector<8x256xf32> to vector<1x256xf32>
    %14 = vector.shape_cast %13 : vector<1x256xf32> to vector<256xf32>
    %15 = vector.broadcast %9 : f32 to vector<256xf32>
    %16 = arith.mulf %15, %14 : vector<256xf32>
    %17 = vector.shape_cast %16 : vector<256xf32> to vector<1x256xf32>
    %18 = arith.mulf %17, %12 : vector<1x256xf32>
    %19 = arith.addf %8, %18 : vector<1x256xf32>
    %c1 = arith.constant 1 : index
    %20 = memref.load %arg1[%c1] : memref<9xf32, #tpu.memory_space<smem>>
    %21 = vector.extract_strided_slice %5 {offsets = [0, 240], sizes = [1, 16], strides = [1, 1]} : vector<1x256xf32> to vector<1x16xf32>
    %22 = vector.extract_strided_slice %5 {offsets = [0, 0], sizes = [1, 240], strides = [1, 1]} : vector<1x256xf32> to vector<1x240xf32>
    %23 = tpu.concatenate %21, %22 in 1 : vector<1x16xf32>, vector<1x240xf32> -> vector<1x256xf32>
    %24 = vector.extract_strided_slice %2 {offsets = [1, 0], sizes = [1, 256], strides = [1, 1]} : vector<8x256xf32> to vector<1x256xf32>
    %25 = vector.shape_cast %24 : vector<1x256xf32> to vector<256xf32>
    %26 = vector.broadcast %20 : f32 to vector<256xf32>
    %27 = arith.mulf %26, %25 : vector<256xf32>
    %28 = vector.shape_cast %27 : vector<256xf32> to vector<1x256xf32>
    %29 = arith.mulf %28, %23 : vector<1x256xf32>
    %30 = arith.addf %19, %29 : vector<1x256xf32>
    %c2 = arith.constant 2 : index
    %31 = memref.load %arg1[%c2] : memref<9xf32, #tpu.memory_space<smem>>
    %32 = vector.extract_strided_slice %5 {offsets = [0, 241], sizes = [1, 15], strides = [1, 1]} : vector<1x256xf32> to vector<1x15xf32>
    %33 = vector.extract_strided_slice %5 {offsets = [0, 0], sizes = [1, 241], strides = [1, 1]} : vector<1x256xf32> to vector<1x241xf32>
    %34 = tpu.concatenate %32, %33 in 1 : vector<1x15xf32>, vector<1x241xf32> -> vector<1x256xf32>
    %35 = vector.extract_strided_slice %2 {offsets = [2, 0], sizes = [1, 256], strides = [1, 1]} : vector<8x256xf32> to vector<1x256xf32>
    %36 = vector.shape_cast %35 : vector<1x256xf32> to vector<256xf32>
    %37 = vector.broadcast %31 : f32 to vector<256xf32>
    %38 = arith.mulf %37, %36 : vector<256xf32>
    %39 = vector.shape_cast %38 : vector<256xf32> to vector<1x256xf32>
    %40 = arith.mulf %39, %34 : vector<1x256xf32>
    %41 = arith.addf %30, %40 : vector<1x256xf32>
    %c3 = arith.constant 3 : index
    %42 = memref.load %arg1[%c3] : memref<9xf32, #tpu.memory_space<smem>>
    %43 = vector.extract_strided_slice %5 {offsets = [0, 255], sizes = [1, 1], strides = [1, 1]} : vector<1x256xf32> to vector<1x1xf32>
    %44 = vector.extract_strided_slice %5 {offsets = [0, 0], sizes = [1, 255], strides = [1, 1]} : vector<1x256xf32> to vector<1x255xf32>
    %45 = tpu.concatenate %43, %44 in 1 : vector<1x1xf32>, vector<1x255xf32> -> vector<1x256xf32>
    %46 = vector.extract_strided_slice %2 {offsets = [3, 0], sizes = [1, 256], strides = [1, 1]} : vector<8x256xf32> to vector<1x256xf32>
    %47 = vector.shape_cast %46 : vector<1x256xf32> to vector<256xf32>
    %48 = vector.broadcast %42 : f32 to vector<256xf32>
    %49 = arith.mulf %48, %47 : vector<256xf32>
    %50 = vector.shape_cast %49 : vector<256xf32> to vector<1x256xf32>
    %51 = arith.mulf %50, %45 : vector<1x256xf32>
    %52 = arith.addf %41, %51 : vector<1x256xf32>
    %c5 = arith.constant 5 : index
    %53 = memref.load %arg1[%c5] : memref<9xf32, #tpu.memory_space<smem>>
    %54 = vector.extract_strided_slice %5 {offsets = [0, 1], sizes = [1, 255], strides = [1, 1]} : vector<1x256xf32> to vector<1x255xf32>
    %55 = vector.extract_strided_slice %5 {offsets = [0, 0], sizes = [1, 1], strides = [1, 1]} : vector<1x256xf32> to vector<1x1xf32>
    %56 = tpu.concatenate %54, %55 in 1 : vector<1x255xf32>, vector<1x1xf32> -> vector<1x256xf32>
    %57 = vector.extract_strided_slice %2 {offsets = [4, 0], sizes = [1, 256], strides = [1, 1]} : vector<8x256xf32> to vector<1x256xf32>
    %58 = vector.shape_cast %57 : vector<1x256xf32> to vector<256xf32>
    %59 = vector.broadcast %53 : f32 to vector<256xf32>
    %60 = arith.mulf %59, %58 : vector<256xf32>
    %61 = vector.shape_cast %60 : vector<256xf32> to vector<1x256xf32>
    %62 = arith.mulf %61, %56 : vector<1x256xf32>
    %63 = arith.addf %52, %62 : vector<1x256xf32>
    %c6 = arith.constant 6 : index
    %64 = memref.load %arg1[%c6] : memref<9xf32, #tpu.memory_space<smem>>
    %65 = vector.extract_strided_slice %5 {offsets = [0, 15], sizes = [1, 241], strides = [1, 1]} : vector<1x256xf32> to vector<1x241xf32>
    %66 = vector.extract_strided_slice %5 {offsets = [0, 0], sizes = [1, 15], strides = [1, 1]} : vector<1x256xf32> to vector<1x15xf32>
    %67 = tpu.concatenate %65, %66 in 1 : vector<1x241xf32>, vector<1x15xf32> -> vector<1x256xf32>
    %68 = vector.extract_strided_slice %2 {offsets = [5, 0], sizes = [1, 256], strides = [1, 1]} : vector<8x256xf32> to vector<1x256xf32>
    %69 = vector.shape_cast %68 : vector<1x256xf32> to vector<256xf32>
    %70 = vector.broadcast %64 : f32 to vector<256xf32>
    %71 = arith.mulf %70, %69 : vector<256xf32>
    %72 = vector.shape_cast %71 : vector<256xf32> to vector<1x256xf32>
    %73 = arith.mulf %72, %67 : vector<1x256xf32>
    %74 = arith.addf %63, %73 : vector<1x256xf32>
    %c7 = arith.constant 7 : index
    %75 = memref.load %arg1[%c7] : memref<9xf32, #tpu.memory_space<smem>>
    %76 = vector.extract_strided_slice %5 {offsets = [0, 16], sizes = [1, 240], strides = [1, 1]} : vector<1x256xf32> to vector<1x240xf32>
    %77 = vector.extract_strided_slice %5 {offsets = [0, 0], sizes = [1, 16], strides = [1, 1]} : vector<1x256xf32> to vector<1x16xf32>
    %78 = tpu.concatenate %76, %77 in 1 : vector<1x240xf32>, vector<1x16xf32> -> vector<1x256xf32>
    %79 = vector.extract_strided_slice %2 {offsets = [6, 0], sizes = [1, 256], strides = [1, 1]} : vector<8x256xf32> to vector<1x256xf32>
    %80 = vector.shape_cast %79 : vector<1x256xf32> to vector<256xf32>
    %81 = vector.broadcast %75 : f32 to vector<256xf32>
    %82 = arith.mulf %81, %80 : vector<256xf32>
    %83 = vector.shape_cast %82 : vector<256xf32> to vector<1x256xf32>
    %84 = arith.mulf %83, %78 : vector<1x256xf32>
    %85 = arith.addf %74, %84 : vector<1x256xf32>
    %c8 = arith.constant 8 : index
    %86 = memref.load %arg1[%c8] : memref<9xf32, #tpu.memory_space<smem>>
    %87 = vector.extract_strided_slice %5 {offsets = [0, 17], sizes = [1, 239], strides = [1, 1]} : vector<1x256xf32> to vector<1x239xf32>
    %88 = vector.extract_strided_slice %5 {offsets = [0, 0], sizes = [1, 17], strides = [1, 1]} : vector<1x256xf32> to vector<1x17xf32>
    %89 = tpu.concatenate %87, %88 in 1 : vector<1x239xf32>, vector<1x17xf32> -> vector<1x256xf32>
    %90 = vector.extract_strided_slice %2 {offsets = [7, 0], sizes = [1, 256], strides = [1, 1]} : vector<8x256xf32> to vector<1x256xf32>
    %91 = vector.shape_cast %90 : vector<1x256xf32> to vector<256xf32>
    %92 = vector.broadcast %86 : f32 to vector<256xf32>
    %93 = arith.mulf %92, %91 : vector<256xf32>
    %94 = vector.shape_cast %93 : vector<256xf32> to vector<1x256xf32>
    %95 = arith.mulf %94, %89 : vector<1x256xf32>
    %96 = arith.addf %85, %95 : vector<1x256xf32>
    %c0_8 = arith.constant 0 : index
    %97 = memref.load %arg2[%c0_8] : memref<1xf32, #tpu.memory_space<smem>>
    %cst_9 = arith.constant 0.000000e+00 : f32
    %98 = vector.broadcast %cst_9 : f32 to vector<1x256xf32>
    %99 = arith.maximumf %96, %98 : vector<1x256xf32>
    %100 = vector.broadcast %97 : f32 to vector<1x256xf32>
    %101 = arith.mulf %100, %99 : vector<1x256xf32>
    %102 = arith.negf %101 : vector<1x256xf32>
    %103 = math.exp %102 : vector<1x256xf32>
    %cst_10 = arith.constant 1.000000e+00 : f32
    %104 = vector.broadcast %cst_10 : f32 to vector<1x256xf32>
    %105 = arith.addf %104, %103 : vector<1x256xf32>
    %106 = arith.divf %104, %105 : vector<1x256xf32>
    %107 = vector.shape_cast %106 : vector<1x256xf32> to vector<1x1x256xf32>
    %108 = vector.broadcast %107 : vector<1x1x256xf32> to vector<1x4x256xf32>
    %109 = arith.addf %0, %108 : vector<1x4x256xf32>
    %110 = vector.shape_cast %1 : vector<4x4xf32> to vector<1x4x4xf32>
    "tpu.trace_start"() <{level = 10 : i32, message = "nfc,nch->nfh"}> : () -> ()
    %cst_11 = arith.constant dense<0.000000e+00> : vector<1x4x256xf32>
    %111 = tpu.matmul %110, %109, %cst_11 {dimension_numbers = #tpu.dot_dimension_numbers<[2], [1], [1], [2], [0, 0, 0, 1, 1, 2], [0], [0]>} : vector<1x4x4xf32>, vector<1x4x256xf32>, vector<1x4x256xf32> -> vector<1x4x256xf32>
    "tpu.trace_stop"() : () -> ()
    %112 = arith.negf %111 : vector<1x4x256xf32>
    %113 = math.exp %112 : vector<1x4x256xf32>
    %cst_12 = arith.constant 1.000000e+00 : f32
    %114 = vector.broadcast %cst_12 : f32 to vector<1x4x256xf32>
    %115 = arith.addf %114, %113 : vector<1x4x256xf32>
    %116 = arith.divf %114, %115 : vector<1x4x256xf32>
    %c0_13 = arith.constant 0 : index
    %c0_14 = arith.constant 0 : index
    %c0_15 = arith.constant 0 : index
    %117 = vector.load %arg6[%c0_13, %c0_14, %c0_15] : memref<1x4x256xf32, #tpu.memory_space<vmem>>, vector<1x4x256xf32>
    tpu.vector_store %arg6[%c0_13, %c0_14, %c0_15], %116 {strides = array<i32>} : memref<1x4x256xf32, #tpu.memory_space<vmem>>, vector<1x4x256xf32>,
    return
  }
  func.func @transform_0(%arg0: i32) -> i32 {
    %c0_i32 = arith.constant 0 : i32
    %c0_i32_0 = arith.constant 0 : i32
    return %c0_i32 : i32
  }
  func.func @transform_1(%arg0: i32) -> i32 {
    %c0_i32 = arith.constant 0 : i32
    %c0_i32_0 = arith.constant 0 : i32
    return %c0_i32 : i32
  }
  func.func @transform_2(%arg0: i32) -> (i32, i32) {
    %c0_i32 = arith.constant 0 : i32
    %c0_i32_0 = arith.constant 0 : i32
    %c0_i32_1 = arith.constant 0 : i32
    return %c0_i32, %c0_i32_0 : i32, i32
  }
  func.func @transform_3(%arg0: i32) -> (i32, i32) {
    %c0_i32 = arith.constant 0 : i32
    %c0_i32_0 = arith.constant 0 : i32
    %c0_i32_1 = arith.constant 0 : i32
    return %c0_i32, %c0_i32_0 : i32, i32
  }
  func.func @transform_4(%arg0: i32) -> (i32, i32, i32) {
    %c0_i32 = arith.constant 0 : i32
    %c0_i32_0 = arith.constant 0 : i32
    %c0_i32_1 = arith.constant 0 : i32
    return %arg0, %c0_i32, %c0_i32_0 : i32, i32, i32
  }
  func.func @transform_5(%arg0: i32) -> (i32, i32, i32) {
    %c0_i32 = arith.constant 0 : i32
    %c0_i32_0 = arith.constant 0 : i32
    %c0_i32_1 = arith.constant 0 : i32
    return %arg0, %c0_i32, %c0_i32_0 : i32, i32, i32
  }
}

</mosaic_0001>

<bundles_post_ra>
// kernel: tpu_custom_call.1
= control target key start
LH: loop header
LB: loop body
LE: loop exit
PB: predicated region body
PF: predicated region fallthrough
CT: control target
= control target key end

     0   :  { %s1387_s0 = inlined_call_operand.vmem [shape: f32[9], index: 0, kind: input, shape index: {}]   ;;  %s1388_s1 = inlined_call_operand.<no memory space> [shape: f32[1], index: 1, kind: input, shape index: {}]   ;;  %s1389_s2 = inlined_call_operand.hbm [shape: f32[4,4], index: 2, kind: input, shape index: {}]   ;;  %s1390_s3 = inlined_call_operand.hbm [shape: f32[8,256], index: 3, kind: input, shape index: {}]   ;;  %s1391_s4 = inlined_call_operand.hbm [shape: f32[2,4,256], index: 4, kind: input, shape index: {}]   ;;  %s1392_s5 = inlined_call_operand.hbm [shape: f32[2,4,256], index: 5, kind: output, shape index: {}]  }
   0x1   :  { %10 = sst [smem:[#allocation2]] %s1388_s1 }
   0x2   :  { %11 = vsyncpa [#allocation6], 0 }
   0x3   :  { %12 = vsyncpa [#allocation4], 0 }
   0x4   :  { %13 = vsyncpa [#allocation9], 0 }
   0x5   :  { %14 = vsyncpa [#allocation5], 0 }
   0x6   :  { %16 = vsyncpa [#allocation5 + $0x1], 0  ;;  %s1129_s20 = smov 0   ;;  %s1131_s21 = smov 0  }
   0x7   :  { %s1133_s22 = smov 0   ;;  %s1135_s23 = smov 0  }
   0x8 LB: > { %s1150_s1 = sadd.s32 4294967295, %s1080_s23   ;;  %s769_s24 = sadd.s32 4294967294, %s1080_s23   ;;  %s1080_s23 = sphi %s1135_s23, %s1418_s23   ;;  %s1076_s22 = sphi %s1133_s22, %s1417_s22   ;;  %s1072_s21 = sphi %s1131_s21, %s1416_s21   ;;  %s1068_s20 = sphi %s1129_s20, %s1415_s20  }
   0x9   : > { %p126_p0 = scmp.ne.s32.totalorder %s1072_s21, %s1068_s20  ;;  %p1393_p1 = scmp.eq.s32.totalorder %s1150_s1, 0 }
   0xa   : > { %p156_p3 = scmp.eq.s32.totalorder %s769_s24, 1  ;;  %p770_p5 = scmp.ge.s32.totalorder %s1080_s23, 1 }
   0xb   : > { %p1159_p4 = por %p1393_p1, %p126_p0  ;;  %p163_p7 = scmp.lt.s32.totalorder %s1080_s23, 3 }
   0xc   : > { %p1164_p6 = por %p156_p3, %p126_p0  ;;  %s1082_s28 = smov [#allocation7]  }
   0xd   : > { %s1397_s25 = scalar_select %p1159_p4, 1, 0 }
   0xe   : > { %s1398_s26 = scalar_select %p1164_p6, 1, 0 }
   0xf   : > { %p1169_p8 = pnand %p770_p5, %p163_p7  ;;  %s190_s29 = sshll.u32 %s1082_s28, 4  ;;  %s191_s29 = int_to_ptr.vmem [resolvable:$true] %s190_s29 }
  0x10   : > { %s176_s7 = sshll.u32 %s1387_s0, 4  ;;  %s1083_s9 = smov [#allocation8]   ;;  %s177_s7 = int_to_ptr.vmem [resolvable:$true] %s176_s7 }
  0x11   : > { %s1399_s27 = scalar_select %p1169_p8, 1, 0 }
  0x12   : > { %p822_p10 = pneg %p1169_p8  ;;  %s201_s10 = sshll.u32 %s1083_s9, 4  ;;  %s1185_s10 = int_to_ptr.vmem [resolvable:$true] %s201_s10 }
  0x13   : > { %s920_s11 = scalar_lea.vmem %s191_s29, 64  ;;  %p928_p5 = scmp.lt.s32.totalorder %s191_s29, %s191_s29 }
  0x14   : > { %p1181_p11 = pnand %p822_p10, %p1393_p1  ;;  %p921_p13 = scmp.ne.s32.totalorder %s191_s29, %s920_s11 }
  0x15   : > { %p929_p7 = scmp.lt.s32.totalorder %s920_s11, %s920_s11 }
  0x16   : > { %p911_p12 = pneg %p1181_p11 }
  0x17   : > { %p930_p10 = por %p929_p7, %p928_p5 }
  0x18   : > { %p923_p0 = pnand %p921_p13, %p911_p12 }
  0x1a   : > { %p924_p3 = pneg %p923_p0 }
  0x1c   : > { %p931_p9 = pnand %p930_p10, %p924_p3 }
  0x1e   : > { %934 = shalt.err (!%p931_p9)
}
  0x1f   : > { %828 = dma.hbm_to_vmem [thread:$0]  (!%p1181_p11), %s1389_s2, 64, %s191_s29, [#allocation4]  }
  0x20   : > { %s935_s14 = scalar_lea.vmem %s177_s7, 16  ;;  %p943_p13 = scmp.lt.s32.totalorder %s177_s7, %s177_s7 }
  0x21   : > { %p936_p1 = scmp.ne.s32.totalorder %s177_s7, %s935_s14  ;;  %p944_p0 = scmp.lt.s32.totalorder %s935_s14, %s935_s14 }
  0x23   : > { %p938_p2 = pnand %p936_p1, %p911_p12  ;;  %p945_p4 = por %p944_p0, %p943_p13 }
  0x25   : > { %p939_p6 = pneg %p938_p2 }
  0x27   : > { %p946_p8 = pnand %p945_p4, %p939_p6 }
  0x29   : > { %949 = shalt.err (!%p946_p8)
}
  0x2a   : > { %s1084_s15 = smov [#allocation3]   ;;  %s961_s16 = scalar_lea.vmem %s1185_s10, 256 }
  0x2b   : > { %825 = dma.vmem_to_smem (!%p1181_p11), %s177_s7, 16, %s1084_s15, [#allocation6]  }
  0x2c   : > { %p962_p9 = scmp.ne.s32.totalorder %s1185_s10, %s961_s16  ;;  %p969_p2 = scmp.lt.s32.totalorder %s1185_s10, %s1185_s10 }
  0x2d   : > { %p970_p5 = scmp.lt.s32.totalorder %s961_s16, %s961_s16 }
  0x2e   : > { %p964_p3 = pnand %p962_p9, %p911_p12 }
  0x2f   : > { %p971_p7 = por %p970_p5, %p969_p2 }
  0x30   : > { %p965_p1 = pneg %p964_p3 }
  0x32   : > { %p972_p4 = pnand %p971_p7, %p965_p1 }
  0x34   : > { %975 = shalt.err (!%p972_p4)
}
  0x35   : > { %831 = dma.hbm_to_vmem [thread:$0]  (!%p1181_p11), %s1390_s3, 256, %s1185_s10, [#allocation9]  }
  0x36   : > { %s1216_s19 = sadd.s32 1, %s1080_s23   ;;  %s113_s28 = sadd.s32 1, %s1076_s22 }
  0x37   : > { %s110_s24 = ssub.s32 %s1080_s23, %s1216_s19  ;;  %p120_p8 = scmp.ne.s32.totalorder %s1076_s22, %s1072_s21 }
  0x38   : > { %p111_p6 = scmp.eq.s32.totalorder %s110_s24, 0  ;;  %p121_p12 = scmp.eq.s32.totalorder %s1080_s23, 0 }
  0x39   : > { %p843_p10 = scmp.lt.s32.totalorder %s1080_s23, 2  ;;  %p1401_p0 = scmp.eq.s32.totalorder %s1150_s1, 1 }
  0x3a   : > { %s1226_s29 = scalar_select %p111_p6, %s1076_s22, %s113_s28  }
  0x3b   : > { %p122_p13 = por %p121_p12, %p120_p8  ;;  %p1230_p9 = por %p1401_p0, %p120_p8 }
  0x3c   : > { %s212_s6 = sand.u32 1, %s1080_s23   ;;  %s214_s7 = sand.u32 1, %s1076_s22  }
  0x3d   : > { %s1402_s30 = scalar_select %p1230_p9, 1, 0 }
  0x3e   : > { %s775_s8 = sshll.u32 %s214_s7, 3  ;;  %s804_s9 = sshll.u32 %s1080_s23, 7 }
  0x3f   : > { %s1240_s12 = scalar_lea.hbm %s1391_s4, %s804_s9  ;;  %s216_s13 = scalar_lea.vmem [#allocation10], %s775_s8 }
  0x40   : > { %s224_s14 = sshll.u32 %s216_s13, 4  ;;  %p1242_p11 = pnand %p843_p10, %p122_p13  ;;  %s225_s14 = int_to_ptr.vmem [resolvable:$true] %s224_s14 }
  0x41   : > { %s213_s16 = scalar_lea.sflag [#allocation4], %s212_s6  ;;  %s976_s17 = scalar_lea.hbm %s1240_s12, 128 }
  0x42   : > { %p977_p3 = scmp.ne.s32.totalorder %s1240_s12, %s976_s17  ;;  %p978_p1 = pneg %p1242_p11 }
  0x43   : > { %s981_s28 = scalar_lea.hbm %s1391_s4, 256  ;;  %p982_p7 = scmp.lt.s32.totalorder %s1240_s12, %s1391_s4 }
  0x44   : > { %p979_p2 = pnand %p978_p1, %p977_p3  ;;  %p983_p4 = scmp.lt.s32.totalorder %s981_s28, %s976_s17 }
  0x46   : > { %p980_p5 = pneg %p979_p2  ;;  %p984_p6 = por %p983_p4, %p982_p7 }
  0x48   : > { %p985_p8 = pnand %p984_p6, %p980_p5 }
  0x4a   : > { %988 = shalt.err (!%p985_p8)
}
  0x4b   : > { %s989_s9 = scalar_lea.vmem %s225_s14, 128  ;;  %s1085_s6 = smov [#allocation10]  }
  0x4c   : > { %p990_p12 = scmp.ne.s32.totalorder %s225_s14, %s989_s9  ;;  %s994_s10 = sshll.u32 %s1085_s6, 4  ;;  %s995_s10 = int_to_ptr.vmem [resolvable:$false] %s994_s10 }
  0x4d   : > { %s996_s11 = scalar_lea.vmem %s995_s10, 256  ;;  %p997_p0 = scmp.lt.s32.totalorder %s225_s14, %s995_s10 }
  0x4e   : > { %p992_p10 = pnand %p990_p12, %p978_p1  ;;  %p998_p3 = scmp.lt.s32.totalorder %s996_s11, %s989_s9 }
  0x50   : > { %p993_p13 = pneg %p992_p10  ;;  %p999_p2 = por %p998_p3, %p997_p0 }
  0x52   : > { %p1000_p9 = pnand %p999_p2, %p993_p13 }
  0x54   : > { %1003 = shalt.err (!%p1000_p9)
}
  0x55   : > { %835 = dma.hbm_to_vmem [thread:$0]  (!%p1242_p11), %s1240_s12, 128, %s225_s14, %s213_s16  }
  0x56   : > { %p1404_p5 = scmp.ne.s32.totalorder %s1399_s27, 0 }
  0x57   : > { %p1405_p7 = scmp.eq.s32.totalorder (!%p1404_p5), %s1150_s1, 0 }
  0x58   : > { %233 = sbr.rel (%p1404_p5) target bundleno = 565 (0x235), region = 40 }
  0x5d   : > { %1047 = dma.done.wait (%p1405_p7), [#allocation6], 16   ;;  %p1406_p1 = pmov %p1405_p7 }
  0x5f   : > { %1049 = vsyncadd (%p1406_p1), [#allocation6], 4294967280  ;;  %p1407_p4 = pmov %p1406_p1 }
  0x60   : > { %p1408_p6 = pmov %p1406_p1 }
  0x61   : > { %1051 = dma.done.wait (%p1407_p4), [#allocation4], 64  }
  0x62   : > { %1053 = vsyncadd (%p1408_p6), [#allocation4], 4294967232  ;;  %p1409_p9 = pmov %p1406_p1 }
  0x63   : > { %p1410_p11 = pmov %p1406_p1 }
  0x64   : > { %1055 = dma.done.wait (%p1409_p9), [#allocation9], 256  }
  0x65   : > { %1057 = vsyncadd (%p1410_p11), [#allocation9], 4294967040  ;;  %s247_s27 = sand.u32 1, %s1150_s1   ;;  %s249_s12 = sand.u32 1, %s1072_s21  }
  0x66   : > { %s1278_s13 = sshll.u32 %s249_s12, 3  ;;  %s248_s14 = scalar_lea.sflag [#allocation4], %s247_s27 }
  0x67   : > { %s251_s15 = scalar_lea.vmem [#allocation10], %s1278_s13  ;;  %p1411_p8 = scmp.ne.s32.totalorder %s1397_s25, 0 }
  0x69   : > { %1059 = dma.done.wait (%p1411_p8), %s248_s14, 128  }
  0x6a   : > { %1061 = vsyncadd (%p1411_p8), %s248_s14, 4294967168 }
  0x6b   : > { %256 = sfence }
  0x6c   : > { %v1285_v0 = vld [vmem:[%s251_s15] sm:$0xff]  ;;  %vm286_vm0 = vcmask 1043456   ;;  %s1086_s25 = smov 17   ;;  %s1087_s16 = smov 16   ;;  %v1094_v18 = vmov 0.0   ;;  %v1300_v23 = vld [vmem:[#allocation8] sm:$0xff] }
  0x6d   : > { %v287_v1 = vsel %vm286_vm0, %v1285_v0, 0.0  ;;  %v284_v2 = vcombine.high %v1285_v0, %v1285_v0  ;;  %s1088_s17 = smov 15   ;;  %s1089_s18 = smov 127   ;;  %629 = vmatprep.mubr.f32.mxu0 %v1094_v18  ;;  %v1302_v24 = vld [vmem:[#allocation8 + $0x8] sm:$0xff]  ;;  %vm334_vm1 = vcmask 130048   ;;  %vm316_vm2 = vcmask 138240  }
  0x6e   : > { %v288_v3 = vrot.slane %v287_v1, 4  ;;  %s1090_s24 = smov 1   ;;  %s1091_s28 = smov 113   ;;  %vm362_vm3 = vcmask 121856   ;;  %vm417_vm4 = vcmask 1039360   ;;  %vm390_vm5 = vcmask 7168  }
  0x6f   : > { %v294_v4 = vsel %vm286_vm0, %v284_v2, 0.0  ;;  %s1092_s7 = smov 112   ;;  %s1093_s8 = smov 111   ;;  %vm445_vm6 = vcmask 924672   ;;  %vm473_vm7 = vcmask 916480   ;;  %vm501_vm8 = vcmask 908288  }
  0x70   : > { %v289_v5 = vadd.f32 %v288_v3, %v287_v1  ;;  %v295_v6 = vrot.slane %v294_v4, 4  ;;  %s785_s9 = sld [smem:[#allocation3 + $0x1]]  ;;  %vm557_vm9 = vcmask 31744   ;;  %p1412_p10 = scmp.ne.s32.totalorder %s1402_s30, 0 }
  0x71   : > { %s308_s6 = sld [smem:[#allocation3]] }
  0x72   : > { %v290_v7 = vrot.slane %v289_v5, 2  ;;  %v296_v8 = vadd.f32 %v295_v6, %v294_v4  ;;  %s1292_s10 = sld [smem:[#allocation3 + $0x4]] }
  0x73   : > { %s1294_s11 = sld [smem:[#allocation3 + $0x2]] }
  0x74   : > { %v291_v9 = vadd.f32 %v290_v7, %v289_v5  ;;  %v297_v10 = vrot.slane %v296_v8, 2  ;;  %s1296_s27 = sld [smem:[#allocation3 + $0x5]] }
  0x75   : > { %s1298_s14 = sld [smem:[#allocation3 + $0x3]] }
  0x76   : > { %v292_v11 = vrot.slane %v291_v9, 1  ;;  %v298_v12 = vadd.f32 %v297_v10, %v296_v8  ;;  %v338_v25 = vstv %s785_s9  ;;  %s1304_s15 = sld [smem:[#allocation3 + $0x6]] }
  0x77   : > { %v321_v26 = vstv %s308_s6  ;;  %v339_v29 = vmul.f32 %v338_v25, %v1300_v23  ;;  %v340_v30 = vmul.f32 %v338_v25, %v1302_v24  ;;  %s654_s6 = scalar_lea.sflag [#allocation5], %s249_s12 }
  0x78   : > { %v293_v13 = vadd.f32 %v292_v11, %v291_v9  ;;  %v299_v14 = vrot.slane %v298_v12, 1  ;;  %v305_v27 = vstv %s1292_s10  ;;  %v322_v31 = vmul.f32 %v321_v26, %v1300_v23 }
  0x79   : > { %v366_v28 = vstv %s1294_s11  ;;  %v323_v35 = vmul.f32 %v321_v26, %v1302_v24  ;;  %s1095_s11 = smov [#allocation11]  }
  0x7a   : > { %v302_v15 = vmul.f32 0.25, %v293_v13  ;;  %v300_v16 = vadd.f32 %v299_v14, %v298_v12  ;;  %v422_v36 = vstv %s1296_s27  ;;  %v367_v39 = vmul.f32 %v366_v28, %v1300_v23 }
  0x7b   : > { %v394_v40 = vstv %s1298_s14  ;;  %v368_v44 = vmul.f32 %v366_v28, %v1302_v24  ;;  %v423_v45 = vmul.f32 %v422_v36, %v1300_v23  ;;  %v424_v46 = vmul.f32 %v422_v36, %v1302_v24 }
  0x7c   : > { %314 = vrot.lane.b32.xlu1 %v302_v15, %s1086_s25  ;;  %332 = vrot.lane.b32.xlu0 %v302_v15, %s1087_s16  ;;  %v303_v17 = vmul.f32 0.25, %v300_v16  ;;  %v306_v34 = vmul.f32 %v305_v27, %v302_v15  ;;  %v395_v51 = vmul.f32 %v394_v40, %v1300_v23  ;;  %v450_v52 = vstv %s1304_s15 }
  0x7d   : > { %v396_v59 = vmul.f32 %v394_v40, %v1302_v24  ;;  %v451_v62 = vmul.f32 %v450_v52, %v1300_v23  ;;  %v452_v63 = vmul.f32 %v450_v52, %v1302_v24 }
  0x7e   : > { %v307_v43 = vmul.f32 %v305_v27, %v303_v17 }
  0x80   : > { %360 = vrot.lane.b32.xlu1 %v302_v15, %s1088_s17  ;;  %413 = vrot.lane.b32.xlu0 %v302_v15, %s1089_s18 }
  0x84   : > { %388 = vrot.lane.b32.xlu1 %v302_v15, %s1090_s24  ;;  %329 = vrot.lane.b32.xlu0 %v303_v17, %s1087_s16  ;;  %s1327_s16 = sld [smem:[#allocation3 + $0x8]] }
  0x88   : > { %310 = vrot.lane.b32.xlu1 %v303_v17, %s1086_s25  ;;  %357 = vrot.lane.b32.xlu0 %v303_v17, %s1088_s17  ;;  %s1316_s25 = sld [smem:[#allocation3 + $0x7]] }
  0x89   : > { %s524_s17 = sld [smem:[#allocation2]] }
  0x8c   : > { %415 = vrot.lane.b32.xlu1 %v303_v17, %s1089_s18  ;;  %385 = vrot.lane.b32.xlu0 %v303_v17, %s1090_s24  ;;  %s805_s18 = sshll.u32 %s1150_s1, 7  ;;  %s278_s24 = scalar_lea.vmem [#allocation11], %s1278_s13 }
  0x8d   : > { %s666_s9 = scalar_lea.hbm %s1392_s5, %s805_s18  ;;  %s1008_s1 = sshll.u32 %s1095_s11, 4  ;;  %s1009_s1 = int_to_ptr.vmem [resolvable:$false] %s1008_s1 }
  0x8e   : > { %v478_v13 = vstv %s1316_s25  ;;  %s1010_s13 = scalar_lea.vmem %s1009_s1, 256 }
  0x8f   : > { %v479_v28 = vmul.f32 %v478_v13, %v1300_v23 }
  0x90   : > { %443 = vrot.lane.b32.xlu1 %v303_v17, %s1091_s28  ;;  %441 = vrot.lane.b32.xlu0 %v302_v15, %s1091_s28  ;;  %s668_s28 = sshll.u32 %s278_s24, 4  ;;  %s669_s28 = int_to_ptr.vmem [resolvable:$true] %s668_s28 }
  0x91   : > { %s1004_s10 = scalar_lea.vmem %s669_s28, 128  ;;  %p1011_p3 = scmp.lt.s32.totalorder %s669_s28, %s1009_s1 }
  0x92   : > { %p1005_p12 = scmp.ne.s32.totalorder %s669_s28, %s1004_s10  ;;  %p1012_p2 = scmp.lt.s32.totalorder %s1010_s13, %s1004_s10 }
  0x94   : > { %471 = vrot.lane.b32.xlu1 %v303_v17, %s1092_s7  ;;  %469 = vrot.lane.b32.xlu0 %v302_v15, %s1092_s7  ;;  %p1006_p13 = pnand %p1005_p12, %p1412_p10  ;;  %p1013_p5 = por %p1012_p2, %p1011_p3 }
  0x96   : > { %p1007_p0 = pneg %p1006_p13 }
  0x98   : > { %499 = vrot.lane.b32.xlu1 %v303_v17, %s1093_s8  ;;  %497 = vrot.lane.b32.xlu0 %v302_v15, %s1093_s8  ;;  %p1014_p7 = pnand %p1013_p5, %p1007_p0 }
  0xee   : > { %v315_v19 = vpop.permute.xlu1 %314  ;;  %v333_v20 = vpop.permute.xlu0 %332 }
  0xf2   : > { %v361_v21 = vpop.permute.xlu1 %360  ;;  %v414_v22 = vpop.permute.xlu0 %413 }
  0xf6   : > { %v389_v32 = vpop.permute.xlu1 %388  ;;  %v330_v33 = vpop.permute.xlu0 %329 }
  0xf7   : > { %v335_v37 = vsel %vm334_vm1, %v333_v20, %v330_v33  ;;  %v337_v38 = vsel %vm334_vm1, %v330_v33, %v333_v20  ;;  %v506_v33 = vstv %s1327_s16 }
  0xf8   : > { %v342_v41 = vrot.slane %v337_v38, 7  ;;  %v343_v42 = vrot.slane %v335_v37, 7 }
  0xfa   : > { %v346_v47 = vmul.f32 %v342_v41, %v339_v29  ;;  %v347_v48 = vmul.f32 %v343_v42, %v340_v30  ;;  %v311_v49 = vpop.permute.xlu1 %310  ;;  %v358_v50 = vpop.permute.xlu0 %357  ;;  %v480_v29 = vmul.f32 %v478_v13, %v1302_v24 }
  0xfb   : > { %v317_v53 = vsel %vm316_vm2, %v315_v19, %v311_v49  ;;  %v320_v54 = vsel %vm316_vm2, %v311_v49, %v315_v19  ;;  %v363_v55 = vsel %vm362_vm3, %v361_v21, %v358_v50  ;;  %v365_v56 = vsel %vm362_vm3, %v358_v50, %v361_v21 }
  0xfc   : > { %v324_v57 = vmul.f32 %v322_v31, %v320_v54  ;;  %v325_v58 = vmul.f32 %v323_v35, %v317_v53  ;;  %v370_v60 = vrot.slane %v365_v56, 6  ;;  %v371_v61 = vrot.slane %v363_v55, 6 }
  0xfd   : > { %v350_v1 = vrot.slane %v346_v47, 1  ;;  %v351_v2 = vrot.slane %v347_v48, 1  ;;  %v507_v53 = vmul.f32 %v506_v33, %v1300_v23  ;;  %v508_v54 = vmul.f32 %v506_v33, %v1302_v24 }
  0xfe   : > { %v326_v3 = vadd.f32 %v324_v57, %v306_v34  ;;  %v327_v4 = vadd.f32 %v325_v58, %v307_v43  ;;  %v416_v5 = vpop.permute.xlu1 %415  ;;  %v386_v6 = vpop.permute.xlu0 %385  ;;  %v374_v7 = vmul.f32 %v370_v60, %v367_v39  ;;  %v375_v8 = vmul.f32 %v371_v61, %v368_v44 }
  0xff   : > { %v418_v9 = vsel %vm417_vm4, %v414_v22, %v416_v5  ;;  %v421_v10 = vsel %vm417_vm4, %v416_v5, %v414_v22  ;;  %v391_v16 = vsel %vm390_vm5, %v389_v32, %v386_v6  ;;  %v393_v17 = vsel %vm390_vm5, %v386_v6, %v389_v32 }
 0x100   : > { %v354_v11 = vadd.f32 %v350_v1, %v326_v3  ;;  %v355_v12 = vadd.f32 %v351_v2, %v327_v4  ;;  %v426_v14 = vrot.slane %v418_v9, 4  ;;  %v427_v15 = vrot.slane %v421_v10, 4 }
 0x101   : > { %v378_v18 = vrot.slane %v374_v7, 2  ;;  %v379_v19 = vrot.slane %v375_v8, 2  ;;  %v398_v20 = vrot.slane %v393_v17, 5  ;;  %v399_v21 = vrot.slane %v391_v16, 5 }
 0x102   : > { %v444_v25 = vpop.permute.xlu1 %443  ;;  %v442_v26 = vpop.permute.xlu0 %441  ;;  %v430_v34 = vmul.f32 %v426_v14, %v423_v45  ;;  %v431_v32 = vmul.f32 %v427_v15, %v424_v46  ;;  %v527_v14 = vstv %s524_s17 }
 0x103   : > { %v446_v27 = vsel %vm445_vm6, %v442_v26, %v444_v25  ;;  %v449_v22 = vsel %vm445_vm6, %v444_v25, %v442_v26  ;;  %v402_v30 = vmul.f32 %v398_v20, %v395_v51  ;;  %v403_v31 = vmul.f32 %v399_v21, %v396_v59 }
 0x104   : > { %v454_v35 = vrot.slane %v446_v27, 3  ;;  %v455_v36 = vrot.slane %v449_v22, 3  ;;  %v382_v37 = vadd.f32 %v378_v18, %v354_v11  ;;  %v383_v38 = vadd.f32 %v379_v19, %v355_v12 }
 0x105   : > { %v406_v39 = vrot.slane %v402_v30, 3  ;;  %v407_v40 = vrot.slane %v403_v31, 3  ;;  %v434_v45 = vrot.slane %v430_v34, 4  ;;  %v435_v46 = vrot.slane %v431_v32, 4 }
 0x106   : > { %v472_v41 = vpop.permute.xlu1 %471  ;;  %v470_v42 = vpop.permute.xlu0 %469  ;;  %v458_v43 = vmul.f32 %v454_v35, %v451_v62  ;;  %v459_v44 = vmul.f32 %v455_v36, %v452_v63  ;;  %v542_v22 = vlaneseq }
 0x107   : > { %v474_v47 = vsel %vm473_vm7, %v470_v42, %v472_v41  ;;  %v477_v48 = vsel %vm473_vm7, %v472_v41, %v470_v42  ;;  %v410_v49 = vadd.f32 %v406_v39, %v382_v37  ;;  %v411_v50 = vadd.f32 %v407_v40, %v383_v38  ;;  %v280_v37 = vld [vmem:[#allocation7] sm:$0xf] }
 0x108   : > { %v482_v51 = vrot.slane %v474_v47, 2  ;;  %v483_v52 = vrot.slane %v477_v48, 2  ;;  %v462_v55 = vrot.slane %v458_v43, 5  ;;  %v463_v56 = vrot.slane %v459_v44, 5 }
 0x109   : > { %v438_v61 = vadd.f32 %v434_v45, %v410_v49  ;;  %v439_v62 = vadd.f32 %v435_v46, %v411_v50 }
 0x10a   : > { %v486_v57 = vmul.f32 %v482_v51, %v479_v28  ;;  %v487_v58 = vmul.f32 %v483_v52, %v480_v29  ;;  %v500_v59 = vpop.permute.xlu1 %499  ;;  %v498_v60 = vpop.permute.xlu0 %497  ;;  %v543_v28 = vshrl.u32 %v542_v22, 7 }
 0x10b   : > { %v502_v63 = vsel %vm501_vm8, %v498_v60, %v500_v59  ;;  %v505_v1 = vsel %vm501_vm8, %v500_v59, %v498_v60  ;;  %v466_v23 = vadd.f32 %v462_v55, %v438_v61  ;;  %v467_v6 = vadd.f32 %v463_v56, %v439_v62 }
 0x10c   : > { %v490_v2 = vrot.slane %v486_v57, 6  ;;  %v491_v3 = vrot.slane %v487_v58, 6  ;;  %v510_v4 = vrot.slane %v502_v63, 1  ;;  %v511_v5 = vrot.slane %v505_v1, 1 }
 0x10d   : > { %v544_v29 = vsub.s32 0, %v543_v28 }
 0x10e   : > { %v514_v24 = vmul.f32 %v510_v4, %v507_v53  ;;  %v515_v7 = vmul.f32 %v511_v5, %v508_v54  ;;  %v494_v8 = vadd.f32 %v490_v2, %v466_v23  ;;  %v495_v9 = vadd.f32 %v491_v3, %v467_v6 }
 0x110   : > { %v518_v10 = vrot.slane %v514_v24, 7  ;;  %v519_v11 = vrot.slane %v515_v7, 7 }
 0x112   : > { %v522_v12 = vadd.f32 %v518_v10, %v494_v8  ;;  %v523_v13 = vadd.f32 %v519_v11, %v495_v9 }
 0x114   : > { %v525_v15 = vmax.f32 %v522_v12, 0.0  ;;  %v526_v16 = vmax.f32 %v523_v13, 0.0 }
 0x116   : > { %v528_v17 = vmul.f32 %v527_v14, %v525_v15  ;;  %v529_v18 = vmul.f32 %v527_v14, %v526_v16 }
 0x118   : > { %v792_v19 = vmul.f32 -1.442695, %v528_v17  ;;  %v793_v20 = vmul.f32 -1.442695, %v529_v18 }
 0x11a   : > { %893 = vpow2.f32 %v792_v19 }
 0x11b   : > { %895 = vpow2.f32 %v793_v20 }
 0x127   : > { %v894_v21 = vpop.eup %893 }
 0x128   : > { %v896_v25 = vpop.eup %895  ;;  %v536_v26 = vadd.f32 1.0, %v894_v21 }
 0x129   : > { %v537_v27 = vadd.f32 1.0, %v896_v25 }
 0x12a   : > { %897 = vrcp.f32 %v536_v26 }
 0x12b   : > { %899 = vrcp.f32 %v537_v27 }
 0x137   : > { %v898_v30 = vpop.eup %897 }
 0x138   : > { %v900_v31 = vpop.eup %899  ;;  %v545_v33 = vrot.slane %v898_v30, %v544_v29 }
 0x139   : > { %v549_v34 = vrot.slane %v900_v31, %v544_v29 }
 0x13b   : > { %v552_v32 = vcombine.low %v545_v33, %v549_v34 }
 0x13d   : > { %v554_v35 = vadd.f32 %v552_v32, %v1285_v0 }
 0x13f   : > { %v556_v36 = vcombine.high %v554_v35, %v554_v35 }
 0x141   : > { %794 = vmatprep.subr.msk.mxu0 %vm286_vm0, %v556_v36 }
 0x142   : > { %795 = vmatpush1.msk.msra.mxu0 %vm286_vm0, %v554_v35 }
 0x143   : > { %796 = vmatmul.mubr.msk.f32.vlgmr.msra.gmra.mxu0 %vm557_vm9, %v280_v37 }
 0x203   : > { %v631_v38 = vpop.f32.mrf.mxu0 }
 0x204   : > { %v797_v39 = vmul.f32 -1.442695, %v631_v38 }
 0x205   : > { %v633_v40 = vpop.f32.mrf.mxu0 }
 0x206   : > { %901 = vpow2.f32 %v797_v39  ;;  %v798_v41 = vmul.f32 -1.442695, %v633_v40 }
 0x208   : > { %903 = vpow2.f32 %v798_v41 }
 0x213   : > { %v902_v42 = vpop.eup %901 }
 0x214   : > { %v642_v43 = vadd.f32 1.0, %v902_v42 }
 0x215   : > { %v904_v0 = vpop.eup %903 }
 0x216   : > { %v643_v44 = vadd.f32 1.0, %v904_v0  ;;  %905 = vrcp.f32 %v642_v43 }
 0x218   : > { %907 = vrcp.f32 %v643_v44 }
 0x223   : > { %v906_v47 = vpop.eup %905 }
 0x225   : > { %v908_v48 = vpop.eup %907 }
 0x226   : > { %v650_v49 = vcombine.low %v906_v47, %v908_v48 }
 0x228   : > { %652 = vst [vmem:[%s278_s24] sm:$0xff] %v650_v49 }
 0x229   : > { %1017 = shalt.err (!%p1014_p7)
}
 0x22a   : > { %s1018_s27 = scalar_lea.hbm %s666_s9, 128  ;;  %s1022_s15 = scalar_lea.hbm %s1392_s5, 256 }
 0x22b   : > { %p1019_p1 = scmp.ne.s32.totalorder %s666_s9, %s1018_s27  ;;  %p1023_p9 = scmp.lt.s32.totalorder %s666_s9, %s1392_s5 }
 0x22c   : > { %p1024_p11 = scmp.lt.s32.totalorder %s1022_s15, %s1018_s27 }
 0x22d   : > { %p1020_p4 = pnand %p1019_p1, %p1412_p10 }
 0x22e   : > { %p1025_p8 = por %p1024_p11, %p1023_p9 }
 0x22f   : > { %p1021_p6 = pneg %p1020_p4 }
 0x231   : > { %p1026_p12 = pnand %p1025_p8, %p1021_p6 }
 0x233   : > { %1029 = shalt.err (!%p1026_p12)
}
 0x234   : > { %820 = dma.vmem_to_hbm [thread:$0]  (%p1412_p10), %s669_s28, 128, %s666_s9, %s654_s6  }
 0x235 PF: > { %s680_s17 = sand.u32 1, %s1068_s20   ;;  %p1413_p13 = scmp.ne.s32.totalorder %s1398_s26, 0 }
 0x236   : > { %p1414_p0 = scmp.ge.s32.totalorder %s1080_s23, 2  ;;  %s681_s18 = scalar_lea.sflag [#allocation5], %s680_s17 }
 0x238   : > { %p837_p3 = pnand %p1414_p0, %p1413_p13 }
 0x23a   : > { %p838_p2 = pneg %p837_p3 }
 0x23c   : > { %1063 = dma.done.wait (%p838_p2), %s681_s18, 128  }
 0x23d   : > { %1065 = vsyncadd (%p838_p2), %s681_s18, 4294967168  ;;  %p19_p5 = scmp.ge.s32.totalorder %s1216_s19, 4   ;;  %s1415_s20 = smov %s1072_s21 }
 0x23e   : > { %s1416_s21 = smov %s1076_s22  ;;  %s1417_s22 = smov %s1226_s29 }
 0x23f   : > { %s1418_s23 = smov %s1216_s19  ;;  %21 = sbr.rel (!%p19_p5) target bundleno = 8 (0x8), region = 97 }
 0x244   :  { %686 = vsyncpa [#allocation4], 1 }
 0x245   :  { %688 = vsyncpa [#allocation4 + $0x1], 1 }
 0x246   :  { %689 = vsyncpa [#allocation9], 1 }
 0x247   :  { %690 = vsyncpa [#allocation5], 1 }
 0x248   :  { %692 = vsyncpa [#allocation5 + $0x1], 1 }
 0x249   :  { %693 = vsyncpa [#allocation6], 1 }
 0x24a   :  { %695 = vsyncpa [#allocation6 + $0x1], 1 }

</bundles_post_ra>
